<compile_context>
chip_gen: v7x
topology: tpu7x:2x2x1
jax: 0.10.0
libtpu: 0.0.40
codegen_flags: <defaults>
</compile_context>

<pallas_src>
import jax
import jax.numpy as jnp
from jax.experimental import pallas as pl
from jax.experimental.pallas import tpu as pltpu


# --------------------------------------------------------------------------
# Kernels
# --------------------------------------------------------------------------
def _kernel_single_k(x_ref, w_ref, b_ref, o_ref):
    # Whole reduction in one tile: no scratch, no init/finalize gating.
    acc = jnp.dot(x_ref[...], w_ref[...], preferred_element_type=jnp.float32)
    o_ref[...] = jnp.maximum(acc + b_ref[...], 0.0).astype(o_ref.dtype)


def _kernel_multi_k_f32_out(x_ref, w_ref, b_ref, o_ref):
    # f32 output: accumulate straight into o_ref (resident across k because
    # the out index_map ignores k) -- no separate scratch, no final copy.
    k = pl.program_id(2)

    @pl.when(k == 0)
    def _init():
        o_ref[...] = jnp.zeros_like(o_ref)

    o_ref[...] += jnp.dot(x_ref[...], w_ref[...],
                          preferred_element_type=jnp.float32)

    @pl.when(k == pl.num_programs(2) - 1)
    def _finalize():
        o_ref[...] = jnp.maximum(o_ref[...] + b_ref[...], 0.0)


def _kernel_multi_k_scratch(x_ref, w_ref, b_ref, o_ref, acc_ref):
    # Non-f32 output: keep an f32 VMEM accumulator, downcast once at the end.
    k = pl.program_id(2)

    @pl.when(k == 0)
    def _init():
        acc_ref[...] = jnp.zeros_like(acc_ref)

    acc_ref[...] += jnp.dot(x_ref[...], w_ref[...],
                            preferred_element_type=jnp.float32)

    @pl.when(k == pl.num_programs(2) - 1)
    def _finalize():
        o_ref[...] = jnp.maximum(acc_ref[...] + b_ref[...], 0.0).astype(o_ref.dtype)


# --------------------------------------------------------------------------
# Tiling helpers
# --------------------------------------------------------------------------
def _round_up(v, m):
    return ((v + m - 1) // m) * m


def _pick_tm(m):
    # bf16 operands -> sublane pack of 16.  For small/awkward batch sizes use
    # a single, exactly-sized M block (bounds MXU/HBM waste from padded rows).
    if m <= 512:
        return _round_up(m, 16)
    for cand in (512, 256, 128):
        if (_round_up(m, cand) - m) * 8 <= m:   # <= 12.5% padding waste
            return cand
    return 128


def _pick_tn(h):
    hp = _round_up(h, 128)
    if hp <= 128:
        return 128
    # Prefer >=2 column blocks so the "parallel" j axis can shard across the
    # two TensorCores on v7x even when the batch fits one M block.
    for cand in (512, 256, 128):
        if hp % cand == 0 and hp // cand >= 2:
            return cand
    return 128


def _pick_tk(k):
    kp = _round_up(k, 128)
    for cand in (1024, 512, 256, 128):
        if kp % cand == 0:
            return cand
    return 128


# --------------------------------------------------------------------------
# One-time weight preparation (do this OUTSIDE the hot path and cache it).
# --------------------------------------------------------------------------
def prepare_encoder_params(w, b, *, compute_dtype=jnp.bfloat16):
    """w: (H, K) PyTorch layout, b: (H,).  Transpose -> (K, H), pad to tile
    multiples, cast weight to bf16.  Returns a dict consumed by encoder_nn."""
    H, K = w.shape
    assert b.shape == (H,), b.shape

    tn = _pick_tn(H)
    tk = _pick_tk(K)
    K_pad = _round_up(K, tk)
    H_pad = _round_up(H, tn)

    w_t = jnp.transpose(w)                               # (K, H)
    if (K_pad, H_pad) != (K, H):
        w_t = jnp.pad(w_t, ((0, K_pad - K), (0, H_pad - H)))
    w_t = w_t.astype(compute_dtype)

    bp = b if H_pad == H else jnp.pad(b, ((0, H_pad - H),))
    bp = bp.astype(jnp.float32).reshape(1, H_pad)

    return dict(w=w_t, b=bp, tn=tn, tk=tk, K=K, H=H,
                K_pad=K_pad, H_pad=H_pad, compute_dtype=compute_dtype)


# --------------------------------------------------------------------------
# Forward pass: relu(x @ W^T + b)
# --------------------------------------------------------------------------
def encoder_nn(x, params):
    assert x.ndim == 2, x.shape
    M, K = x.shape
    assert K == params["K"], (K, params["K"])

    tn, tk = params["tn"], params["tk"]
    K_pad, H_pad, H = params["K_pad"], params["H_pad"], params["H"]
    compute_dtype = params["compute_dtype"]
    wp, bp = params["w"], params["b"]

    tm = _pick_tm(M)
    M_pad = _round_up(M, tm)

    # Pad only if needed, then cast activations to bf16 (zeros stay zero, so
    # padded K contributes nothing to the dot; padded M/H rows are sliced off).
    xp = x if (M_pad == M and K_pad == K) else jnp.pad(
        x, ((0, M_pad - M), (0, K_pad - K)))
    xp = xp.astype(compute_dtype)

    out_dtype = x.dtype
    m_blocks = M_pad // tm
    n_blocks = H_pad // tn
    k_blocks = K_pad // tk

    in_bytes = jnp.dtype(compute_dtype).itemsize
    out_bytes = jnp.dtype(out_dtype).itemsize

    # Advisory cost: counts operand re-reads (x read n_blocks times, w read
    # m_blocks times).
    cost = pl.CostEstimate(
        flops=2 * M_pad * K_pad * H_pad,
        transcendentals=0,
        bytes_accessed=(
            M_pad * K_pad * in_bytes * n_blocks
            + K_pad * H_pad * in_bytes * m_blocks
            + H_pad * 4
            + M_pad * H_pad * out_bytes
        ),
    )

    use_scratch = (k_blocks > 1) and (out_dtype != jnp.float32)

    # Double-buffered tile footprint; only raise the scoped-VMEM limit if we
    # would actually exceed the conservative default (keeps v7x's 64 MiB-
    # physical / 32 MiB-scoped budget safe by construction).
    footprint = (2 * tm * tk * in_bytes + 2 * tk * tn * in_bytes
                 + 2 * tn * 4 + 2 * tm * tn * out_bytes
                 + (tm * tn * 4 if use_scratch else 0))
    vmem_limit = None
    if footprint > 12 * 1024 * 1024:
        vmem_limit = min(2 * footprint, 48 * 1024 * 1024)

    if k_blocks == 1:
        # ---- single-K fast path: 2-D grid, no accumulator ----
        grid = (m_blocks, n_blocks)
        in_specs = [
            pl.BlockSpec((tm, tk), lambda i, j: (i, 0)),    # x
            pl.BlockSpec((tk, tn), lambda i, j: (0, j)),    # w_t
            pl.BlockSpec((1, tn), lambda i, j: (0, j)),     # bias
        ]
        out_specs = pl.BlockSpec((tm, tn), lambda i, j: (i, j))
        scratch_shapes = []
        kernel = _kernel_single_k
        dim_sem = ("parallel", "parallel")
    else:
        grid = (m_blocks, n_blocks, k_blocks)
        in_specs = [
            pl.BlockSpec((tm, tk), lambda i, j, k: (i, k)),  # x
            pl.BlockSpec((tk, tn), lambda i, j, k: (k, j)),  # w_t
            pl.BlockSpec((1, tn), lambda i, j, k: (0, j)),   # bias
        ]
        out_specs = pl.BlockSpec((tm, tn), lambda i, j, k: (i, j))
        if use_scratch:
            scratch_shapes = [pltpu.VMEM((tm, tn), jnp.float32)]
            kernel = _kernel_multi_k_scratch
        else:
            scratch_shapes = []
            kernel = _kernel_multi_k_f32_out
        dim_sem = ("parallel", "parallel", "arbitrary")

    out_padded = pl.pallas_call(
        kernel,
        out_shape=jax.ShapeDtypeStruct((M_pad, H_pad), out_dtype),
        grid_spec=pltpu.PrefetchScalarGridSpec(
            num_scalar_prefetch=0,
            grid=grid,
            in_specs=in_specs,
            out_specs=out_specs,
            scratch_shapes=scratch_shapes,
        ),
        compiler_params=pltpu.CompilerParams(
            dimension_semantics=dim_sem,
            vmem_limit_bytes=vmem_limit,
        ),
        cost_estimate=cost,
    )(xp, wp, bp)

    return out_padded[:M, :H]


# --------------------------------------------------------------------------
# Self-contained sanity check
# --------------------------------------------------------------------------
if __name__ == "__main__":
    batch, input_size, hidden_size = 2, 16, 32

    key = jax.random.PRNGKey(0)
    kx, kw, kb = jax.random.split(key, 3)

    x = jax.random.normal(kx, (batch, input_size), dtype=jnp.float32)
    # PyTorch-style uniform init with bound 1/sqrt(fan_in).
    bound = 1.0 / (input_size ** 0.5)
    w = jax.random.uniform(kw, (hidden_size, input_size),
                           minval=-bound, maxval=bound, dtype=jnp.float32)
    b = jax.random.uniform(kb, (hidden_size,),
                           minval=-bound, maxval=bound, dtype=jnp.float32)

    # One-time weight prep (transpose + pad + bf16 cast), cached outside the
    # hot path; the per-call wrapper only touches the activations.
    params = prepare_encoder_params(w, b)

    out = encoder_nn(x, params)
    out = jax.block_until_ready(out)

    # Reference with the same bf16 operand rounding, f32 accumulation.
    x16 = x.astype(jnp.bfloat16).astype(jnp.float32)
    w16 = w.astype(jnp.bfloat16).astype(jnp.float32)
    ref = jnp.maximum(x16 @ w16.T + b[None, :], 0.0)

    assert out.shape == (batch, hidden_size), out.shape
    assert out.dtype == x.dtype, out.dtype
    assert jnp.allclose(out, ref, atol=2e-3, rtol=2e-3), \
        float(jnp.max(jnp.abs(out - ref)))

    print("KERNEL_OK")
</pallas_src>

<mosaic_0001>
module attributes {stable_mosaic.version = 11 : i64} {
  func.func @_kernel_single_k(%arg0: i32, %arg1: i32, %arg2: memref<16x128xbf16, #tpu.memory_space<vmem>>, %arg3: memref<128x128xbf16, #tpu.memory_space<vmem>>, %arg4: memref<1x128xf32, #tpu.memory_space<vmem>>, %arg5: memref<16x128xf32, #tpu.memory_space<vmem>>) attributes {dimension_semantics = [#tpu.dimension_semantics<parallel>, #tpu.dimension_semantics<parallel>], iteration_bounds = array<i64: 1, 1>, scalar_prefetch = 0 : i64, scratch_operands = 0 : i64, tpu.core_type = #tpu.core_type<tc>, window_params = [{transform_indices = @transform_0, window_bounds = array<i64: 16, 128>}, {transform_indices = @transform_1, window_bounds = array<i64: 128, 128>}, {transform_indices = @transform_2, window_bounds = array<i64: 1, 128>}, {transform_indices = @transform_3, window_bounds = array<i64: 16, 128>}]} {
    %c0 = arith.constant 0 : index
    %c0_0 = arith.constant 0 : index
    %0 = vector.load %arg2[%c0, %c0_0] : memref<16x128xbf16, #tpu.memory_space<vmem>>, vector<16x128xbf16>
    %c0_1 = arith.constant 0 : index
    %c0_2 = arith.constant 0 : index
    %1 = vector.load %arg3[%c0_1, %c0_2] : memref<128x128xbf16, #tpu.memory_space<vmem>>, vector<128x128xbf16>
    %cst = arith.constant dense<0.000000e+00> : vector<16x128xf32>
    %2 = tpu.matmul %0, %1, %cst {dimension_numbers = #tpu.dot_dimension_numbers<[1], [0], [0], [1], [0, 0, 1, 1], [], []>} : vector<16x128xbf16>, vector<128x128xbf16>, vector<16x128xf32> -> vector<16x128xf32>
    %c0_3 = arith.constant 0 : index
    %c0_4 = arith.constant 0 : index
    %3 = vector.load %arg4[%c0_3, %c0_4] : memref<1x128xf32, #tpu.memory_space<vmem>>, vector<1x128xf32>
    %4 = vector.broadcast %3 : vector<1x128xf32> to vector<16x128xf32>
    %5 = arith.addf %2, %4 : vector<16x128xf32>
    %cst_5 = arith.constant 0.000000e+00 : f32
    %6 = vector.broadcast %cst_5 : f32 to vector<16x128xf32>
    %7 = arith.maximumf %5, %6 : vector<16x128xf32>
    %c0_6 = arith.constant 0 : index
    %c0_7 = arith.constant 0 : index
    %8 = vector.load %arg5[%c0_6, %c0_7] : memref<16x128xf32, #tpu.memory_space<vmem>>, vector<16x128xf32>
    tpu.vector_store %arg5[%c0_6, %c0_7], %7 {strides = array<i32>} : memref<16x128xf32, #tpu.memory_space<vmem>>, vector<16x128xf32>,
    return
  }
  func.func @transform_0(%arg0: i32, %arg1: i32) -> (i32, i32) {
    %c0_i32 = arith.constant 0 : i32
    %c0_i32_0 = arith.constant 0 : i32
    return %arg0, %c0_i32 : i32, i32
  }
  func.func @transform_1(%arg0: i32, %arg1: i32) -> (i32, i32) {
    %c0_i32 = arith.constant 0 : i32
    %c0_i32_0 = arith.constant 0 : i32
    return %c0_i32, %arg1 : i32, i32
  }
  func.func @transform_2(%arg0: i32, %arg1: i32) -> (i32, i32) {
    %c0_i32 = arith.constant 0 : i32
    %c0_i32_0 = arith.constant 0 : i32
    return %c0_i32, %arg1 : i32, i32
  }
  func.func @transform_3(%arg0: i32, %arg1: i32) -> (i32, i32) {
    %c0_i32 = arith.constant 0 : i32
    return %arg0, %arg1 : i32, i32
  }
}

</mosaic_0001>

<bundles_post_ra>
// kernel: tpu_custom_call.1
= control target key start
LH: loop header
LB: loop body
LE: loop exit
PB: predicated region body
PF: predicated region fallthrough
CT: control target
= control target key end

     0   :  { %8 = vsyncpa [#allocation3], 0  ;;  %s383_s0 = inlined_call_operand.hbm [shape: bf16[16,128], index: 0, kind: input, shape index: {}]   ;;  %s384_s1 = inlined_call_operand.hbm [shape: bf16[128,128], index: 1, kind: input, shape index: {}]   ;;  %s385_s2 = inlined_call_operand.vmem [shape: f32[1,128], index: 2, kind: input, shape index: {}]   ;;  %s386_s3 = inlined_call_operand.hbm [shape: f32[16,128], index: 3, kind: output, shape index: {}]  }
   0x1   :  { %9 = vsyncpa [#allocation6], 0 }
   0x2   :  { %10 = vsyncpa [#allocation4], 0  ;;  %s315_s12 = smov [#allocation2]   ;;  %s243_s16 = scalar_lea.hbm %s383_s0, 128 }
   0x3   :  { %s16_s13 = sshll.u32 %s315_s12, 4  ;;  %p244_p0 = scmp.ne.s32.totalorder %s383_s0, %s243_s16  ;;  %s17_s13 = int_to_ptr.vmem [resolvable:$true] %s16_s13 }
   0x4   :  { %p247_p1 = scmp.lt.u32.totalorder %s243_s16, %s383_s0 }
   0x6   :  { %p249_p2 = pnand %p247_p1, %p244_p0 }
   0x8   :  { %252 = shalt.err (!%p249_p2)
}
   0x9   :  { %s253_s21 = scalar_lea.vmem %s17_s13, 128  ;;  %p258_p4 = scmp.lt.s32.totalorder %s17_s13, %s17_s13 }
   0xa   :  { %p254_p3 = scmp.ne.s32.totalorder %s17_s13, %s253_s21  ;;  %p259_p5 = scmp.lt.s32.totalorder %s253_s21, %s253_s21 }
   0xc   :  { %p260_p6 = por %p259_p5, %p258_p4 }
   0xe   :  { %p261_p7 = pnand %p260_p6, %p254_p3 }
  0x10   :  { %264 = shalt.err (!%p261_p7)
}
  0x11   :  { %s316_s22 = smov 64   ;;  %s317_s23 = smov 4  }
  0x12   :  { %22 = dma.hbm_to_vmem [thread:$0]  %s383_s0, 128, %s17_s13, [#allocation3], %s316_s22, %s316_s22, %s317_s23  }
  0x13   :  { %s318_s26 = smov [#allocation5]   ;;  %s265_s30 = scalar_lea.hbm %s384_s1, 1024 }
  0x14   :  { %s28_s27 = sshll.u32 %s318_s26, 4  ;;  %p266_p8 = scmp.ne.s32.totalorder %s384_s1, %s265_s30  ;;  %s29_s27 = int_to_ptr.vmem [resolvable:$true] %s28_s27 }
  0x15   :  { %p269_p9 = scmp.lt.u32.totalorder %s265_s30, %s384_s1 }
  0x17   :  { %p271_p10 = pnand %p269_p9, %p266_p8 }
  0x19   :  { %274 = shalt.err (!%p271_p10)
}
  0x1a   :  { %s275_s8 = scalar_lea.vmem %s29_s27, 1024  ;;  %p280_p12 = scmp.lt.s32.totalorder %s29_s27, %s29_s27 }
  0x1b   :  { %p276_p11 = scmp.ne.s32.totalorder %s29_s27, %s275_s8  ;;  %p281_p13 = scmp.lt.s32.totalorder %s275_s8, %s275_s8 }
  0x1d   :  { %p282_p0 = por %p281_p13, %p280_p12 }
  0x1f   :  { %p283_p1 = pnand %p282_p0, %p276_p11 }
  0x21   :  { %286 = shalt.err (!%p283_p1)
}
  0x22   :  { %34 = dma.hbm_to_vmem [thread:$0]  %s384_s1, 1024, %s29_s27, [#allocation6], %s316_s22, %s316_s22, %s317_s23  }
  0x23   :  { %309 = dma.done.wait [#allocation3], 128  }
  0x24   :  { %310 = vsyncadd [#allocation3], 4294967168 }
  0x25   :  { %311 = dma.done.wait [#allocation6], 1024  }
  0x26   :  { %312 = vsyncadd [#allocation6], 4294966272  ;;  %v319_v0 = vmov 0.0   ;;  %vm320_vm0 = vmmov 0   ;;  %v234_v1 = vld [vmem:[#allocation5] sm:$0xff]   ;;  %v235_v2 = vld [vmem:[#allocation5 + $0x8] sm:$0xff]  }
  0x27   :  { %205 = vmatprep.subr.bf16.mxu0 %v319_v0  ;;  %221 = vmatprep.mubr.msk.bf16.mxu0 %vm320_vm0, %v319_v0  ;;  %v236_v3 = vld [vmem:[#allocation5 + $0x10] sm:$0xff]   ;;  %v237_v4 = vld [vmem:[#allocation5 + $0x18] sm:$0xff]   ;;  %v238_v5 = vld [vmem:[#allocation5 + $0x20] sm:$0xff]   ;;  %s321_s11 = smov [#allocation7]  }
  0x28   :  { %206 = vmatpush3.bf16.msra.mxu0 %v234_v1  ;;  %v239_v6 = vld [vmem:[#allocation5 + $0x28] sm:$0xff]   ;;  %v240_v7 = vld [vmem:[#allocation5 + $0x30] sm:$0xff]   ;;  %v241_v8 = vld [vmem:[#allocation5 + $0x38] sm:$0xff]   ;;  %s173_s12 = sshll.u32 %s321_s11, 4  ;;  %s174_s12 = int_to_ptr.vmem [resolvable:$true] %s173_s12 }
  0x29   :  { %207 = vmatprep.subr.bf16.mxu0 %v319_v0  ;;  %v242_v9 = vld [vmem:[#allocation2] sm:$0xff]   ;;  %s287_s13 = scalar_lea.vmem %s174_s12, 256  ;;  %p292_p3 = scmp.lt.s32.totalorder %s174_s12, %s174_s12 }
  0x2a   :  { %v186_v10 = vld [vmem:[%s385_s2] ss:$0 sm:$0xff]  ;;  %p288_p2 = scmp.ne.s32.totalorder %s174_s12, %s287_s13  ;;  %p293_p4 = scmp.lt.s32.totalorder %s287_s13, %s287_s13 }
  0x2c   :  { %208 = vmatpush3.bf16.msra.mxu0 %v235_v2  ;;  %p294_p5 = por %p293_p4, %p292_p3 }
  0x2d   :  { %209 = vmatprep.subr.bf16.mxu0 %v319_v0 }
  0x2e   :  { %p295_p6 = pnand %p294_p5, %p288_p2 }
  0x30   :  { %210 = vmatpush3.bf16.msra.mxu0 %v236_v3 }
  0x31   :  { %211 = vmatprep.subr.bf16.mxu0 %v319_v0 }
  0x34   :  { %212 = vmatpush3.bf16.msra.mxu0 %v237_v4 }
  0x35   :  { %213 = vmatprep.subr.bf16.mxu0 %v319_v0 }
  0x38   :  { %214 = vmatpush3.bf16.msra.mxu0 %v238_v5 }
  0x39   :  { %215 = vmatprep.subr.bf16.mxu0 %v319_v0 }
  0x3c   :  { %216 = vmatpush3.bf16.msra.mxu0 %v239_v6 }
  0x3d   :  { %217 = vmatprep.subr.bf16.mxu0 %v319_v0 }
  0x40   :  { %218 = vmatpush3.bf16.msra.mxu0 %v240_v7 }
  0x41   :  { %219 = vmatprep.subr.bf16.mxu0 %v319_v0 }
  0x44   :  { %220 = vmatpush3.bf16.msra.mxu0 %v241_v8 }
  0x47   :  { %222 = vmatmul.mubr.bf16.vlgmr.msra.gmra.mrb[0].mxu0 %v242_v9 }
 0x11a   :  { %v157_v11 = vpop.f32.mrb[0].mxu0 }
 0x11b   :  { %v158_v12 = vadd.f32 %v186_v10, %v157_v11  ;;  %v223_v13 = vpop.f32.mrb[1].mxu0 }
 0x11c   :  { %v160_v14 = vpop.f32.mrb[2].mxu0 }
 0x11d   :  { %v164_v15 = vmax.f32 %v158_v12, 0.0  ;;  %v161_v16 = vadd.f32 %v186_v10, %v160_v14  ;;  %v224_v17 = vpop.f32.mrb[3].mxu0 }
 0x11f   :  { %166 = vst [vmem:[#allocation7] sm:$0xff] %v164_v15  ;;  %v165_v18 = vmax.f32 %v161_v16, 0.0 }
 0x121   :  { %167 = vst [vmem:[#allocation7 + $0x8] sm:$0xff] %v165_v18 }
 0x122   :  { %298 = shalt.err (!%p295_p6)
}
 0x123   :  { %s299_s15 = scalar_lea.hbm %s386_s3, 256 }
 0x124   :  { %p300_p7 = scmp.ne.s32.totalorder %s386_s3, %s299_s15  ;;  %p303_p8 = scmp.lt.u32.totalorder %s299_s15, %s386_s3 }
 0x126   :  { %p305_p9 = pnand %p303_p8, %p300_p7 }
 0x128   :  { %308 = shalt.err (!%p305_p9)
}
 0x129   :  { %s322_s20 = smov 128   ;;  %s323_s21 = smov 8  }
 0x12a   :  { %179 = dma.vmem_to_hbm [thread:$0]  %s174_s12, 256, %s386_s3, [#allocation4], %s322_s20, %s322_s20, %s323_s21  }
 0x12b   :  { %313 = dma.done.wait [#allocation4], 256  }
 0x12c   :  { %314 = vsyncadd [#allocation4], 4294967040 }
 0x12d   :  { %183 = vsyncpa [#allocation3], 1 }
 0x12e   :  { %184 = vsyncpa [#allocation6], 1 }
 0x12f   :  { %185 = vsyncpa [#allocation4], 1 }

</bundles_post_ra>
